<compile_context>
chip_gen: v7x
topology: tpu7x:2x2x1
jax: 0.10.0
libtpu: 0.0.40
codegen_flags: <defaults>
</compile_context>

<pallas_src>
import math

import numpy as np
import jax
import jax.numpy as jnp
from jax import lax
from jax.experimental import pallas as pl
from jax.experimental.pallas import tpu as pltpu


def _round_up(a, m):
    return (a + m - 1) // m * m


# -----------------------------------------------------------------------------
# Parameter preparation — run ONCE per parameter set (hoisted out of forward).
# -----------------------------------------------------------------------------
def prepare_quadratic_params(W, b, in_features, *, linear_terms=True,
                             weight_dtype=jnp.float32):
    """Packs W (OUT, tri(N) [+ N]) + bias into a block-triangular layout.

    Linear terms and bias are folded in via a constant-1 feature column
    (monomials x_j*1 carry the linear weights, 1*1 carries the bias).
    """
    N = int(in_features)
    OUT = int(W.shape[0])
    tri = N * (N + 1) // 2
    Npr = N + 1                                   # +1: constant-one feature
    TO = 128                                      # lane-dense output tile
    OUTp = _round_up(OUT, TO)
    n_oo = OUTp // TO
    Np = _round_up(Npr, 8) if Npr <= 128 else _round_up(Npr, 128)
    T = min(Np, 128)                              # (i, j) block tile
    Nb = Np // T
    nbt = Nb * (Nb + 1) // 2                      # packed lower-tri blocks

    # ---- static (numpy) gather plan over the (i, j) monomial plane ----
    tmat = np.zeros((Np, Np), np.int64)           # source row in Wsrc for (i, j)
    msk = np.zeros((Np, Np), bool)
    rows, cols = np.tril_indices(N)               # same order as torch.tril_indices
    tmat[rows, cols] = np.arange(tri)
    msk[rows, cols] = True
    if linear_terms:
        tmat[N, :N] = tri + np.arange(N)          # x_j * 1  -> linear weights
        msk[N, :N] = True
    if b is not None:
        tmat[N, N] = tri + N                      # 1 * 1    -> bias
        msk[N, N] = True

    gather_idx = np.zeros((nbt, T * T), np.int32)
    gather_msk = np.zeros((nbt, T * T), bool)
    ki_of = np.zeros((nbt,), np.int32)
    kj_of = np.zeros((nbt,), np.int32)
    bt = 0
    for ki in range(Nb):
        for kj in range(ki + 1):
            ii = ki * T + np.arange(T)[:, None]
            jj = kj * T + np.arange(T)[None, :]
            gather_idx[bt] = tmat[ii, jj].reshape(-1)
            gather_msk[bt] = msk[ii, jj].reshape(-1)
            ki_of[bt] = ki
            kj_of[bt] = kj
            bt += 1

    # ---- source table: [quad^T ; linear^T ; bias] ----
    W = jnp.asarray(W, jnp.float32)
    WqT = W[:, :tri].T                                            # (tri, OUT)
    WlT = (W[:, tri:tri + N].T if linear_terms
           else jnp.zeros((N, OUT), jnp.float32))                 # (N, OUT)
    bvec = (jnp.zeros((OUT,), jnp.float32) if b is None
            else jnp.broadcast_to(jnp.asarray(b, jnp.float32).reshape(-1), (OUT,)))
    Wsrc = jnp.concatenate([WqT, WlT, bvec.reshape(1, OUT)], axis=0)

    packed = jnp.where(jnp.asarray(gather_msk)[..., None],
                       jnp.take(Wsrc, jnp.asarray(gather_idx), axis=0),
                       jnp.zeros((), jnp.float32))                # (nbt, T*T, OUT)
    packed = jnp.pad(packed, ((0, 0), (0, 0), (0, OUTp - OUT)))
    # contiguous (T*T, TO) slab per (block, out-tile) -> contiguous weight DMAs
    packed = packed.reshape(nbt, T * T, n_oo, TO).transpose(0, 2, 1, 3)
    packed = packed.astype(weight_dtype)

    meta = dict(N=N, Np=Np, T=T, Nb=Nb, nbt=nbt,
                OUT=OUT, OUTp=OUTp, TO=TO, n_oo=n_oo,
                weight_dtype=weight_dtype)
    return dict(packed=packed,
                ki_of=jnp.asarray(ki_of), kj_of=jnp.asarray(kj_of),
                meta=meta)


# -----------------------------------------------------------------------------
# Kernel
# -----------------------------------------------------------------------------
def _make_quadratic_kernel(T, C, nbt, compute_dtype):
    n_chunks = T // C

    def kernel(ki_ref, kj_ref, xi_ref, xj_ref, w_ref, o_ref, acc_ref):
        del ki_ref, kj_ref                      # consumed by the index_maps only
        t = pl.program_id(2)

        @pl.when(t == 0)
        def _init():
            acc_ref[...] = jnp.zeros_like(acc_ref)

        xi = xi_ref[...].astype(jnp.float32)    # (TB, T)
        xj = xj_ref[...].astype(jnp.float32)    # (TB, T)
        tb = xi.shape[0]

        # Build monomials in small (TB, C*T) slabs (never the full (TB, T*T)
        # tensor); each slab is fed straight to the MXU against the matching
        # contiguous rows of the packed weight block.
        for c in range(n_chunks):
            xi_c = xi[:, c * C:(c + 1) * C]                              # (TB, C)
            slab = (xi_c[:, :, None] * xj[:, None, :]).reshape(tb, C * T)
            acc_ref[...] += jnp.dot(slab.astype(compute_dtype),
                                    w_ref[c * C * T:(c + 1) * C * T, :],
                                    preferred_element_type=jnp.float32)

        @pl.when(t == nbt - 1)
        def _finalize():
            o_ref[...] = acc_ref[...].astype(o_ref.dtype)

    return kernel


# -----------------------------------------------------------------------------
# Forward pass with pre-packed parameters.
# -----------------------------------------------------------------------------
def quadratic_pallas_apply(x, params):
    meta = params["meta"]
    N, Np, T = meta["N"], meta["Np"], meta["T"]
    nbt, OUT, OUTp, TO, n_oo = meta["nbt"], meta["OUT"], meta["OUTp"], meta["TO"], meta["n_oo"]
    compute_dtype = meta["weight_dtype"]

    lead = x.shape[:-1]
    x2 = x.reshape(-1, N)                       # support (*, N) like PyTorch
    B = x2.shape[0]

    # Batch tile: multiple of 8, up to 256, for weight-block reuse per fetch.
    TB = min(_round_up(B, 8), 256)
    Bp = _round_up(B, TB)

    # Pad features to Np and append the constant-1 column (folds linear + bias).
    xp = jnp.pad(x2, ((0, Bp - B), (0, Np - N)))
    xp = xp.at[:, N].set(jnp.asarray(1, xp.dtype))

    C = 16 if T % 16 == 0 else 8                # monomial slab chunk along i
    grid = (Bp // TB, n_oo, nbt)                # reduction axis last

    xi_spec = pl.BlockSpec((TB, T), lambda bb, oo, t, ki, kj: (bb, ki[t]))
    xj_spec = pl.BlockSpec((TB, T), lambda bb, oo, t, ki, kj: (bb, kj[t]))
    w_spec = pl.BlockSpec((None, None, T * T, TO),
                          lambda bb, oo, t, ki, kj: (t, oo, 0, 0))
    out_spec = pl.BlockSpec((TB, TO), lambda bb, oo, t, ki, kj: (bb, oo))

    kernel = _make_quadratic_kernel(T, C, nbt, compute_dtype)

    y = pl.pallas_call(
        kernel,
        out_shape=jax.ShapeDtypeStruct((Bp, OUTp), x.dtype),
        grid_spec=pltpu.PrefetchScalarGridSpec(
            num_scalar_prefetch=2,
            grid=grid,
            in_specs=[xi_spec, xj_spec, w_spec],
            out_specs=out_spec,
            scratch_shapes=[pltpu.VMEM((TB, TO), jnp.float32)],
        ),
        compiler_params=pltpu.CompilerParams(
            dimension_semantics=("parallel", "parallel", "arbitrary"),
            vmem_limit_bytes=48 * 1024 * 1024,   # fits the v7x 64 MiB/TC budget
        ),
    )(params["ki_of"], params["kj_of"], xp, xp, params["packed"])

    return y[:B, :OUT].reshape(*lead, OUT)


def quadratic_pallas(x, W, b=None, *, linear_terms=True, weight_dtype=jnp.float32,
                     xla_small_fastpath=False):
    """One-shot convenience wrapper (prefer hoisting prepare_quadratic_params)."""
    # Tiny problems are dominated by padding / launch overhead; optional XLA path.
    if xla_small_fastpath and x.shape[-1] <= 32 and W.shape[0] <= 128:
        return quadratic_ref(x, W, b, linear_terms=linear_terms)
    params = prepare_quadratic_params(W, b, x.shape[-1], linear_terms=linear_terms,
                                      weight_dtype=weight_dtype)
    return quadratic_pallas_apply(x, params)


# -----------------------------------------------------------------------------
# Pure-JAX reference (mirrors the PyTorch code exactly).
# -----------------------------------------------------------------------------
def quadratic_ref(x, W, b, *, linear_terms=True):
    N = x.shape[-1]
    rows, cols = np.tril_indices(N)
    idx = rows * N + cols
    outer = x[..., :, None] * x[..., None, :]
    x_quad = outer.reshape(*x.shape[:-1], N * N)[..., idx]
    if linear_terms:
        x_quad = jnp.concatenate([x_quad, x], axis=-1)
    y = jnp.dot(x_quad, W.T, precision=lax.Precision.HIGHEST)
    if b is not None:
        y = y + b
    return y


if __name__ == "__main__":
    key = jax.random.PRNGKey(0)
    kx1, kw1, kb1, kx2, kw2, kx3, kw3, kb3 = jax.random.split(key, 8)

    # --- Config 1: module defaults (bias + linear terms) ---
    B, IN, OUT = 8, 8, 16
    fan_in = IN * (IN + 1) // 2 + IN
    x = jax.random.normal(kx1, (B, IN), dtype=jnp.float32)
    bound = 1.0 / math.sqrt(fan_in)
    W = jax.random.uniform(kw1, (OUT, fan_in), minval=-bound, maxval=bound,
                           dtype=jnp.float32)
    b = jax.random.uniform(kb1, (OUT,), minval=-bound, maxval=bound,
                           dtype=jnp.float32)
    params = prepare_quadratic_params(W, b, IN, linear_terms=True)
    y = jax.block_until_ready(quadratic_pallas_apply(x, params))
    np.testing.assert_allclose(np.asarray(y),
                               np.asarray(quadratic_ref(x, W, b, linear_terms=True)),
                               rtol=1e-5, atol=1e-5)

    # --- Config 2: batch/feature/OUT padding, no bias, no linear terms ---
    B2, IN2, OUT2 = 20, 12, 24
    tri2 = IN2 * (IN2 + 1) // 2
    x2 = jax.random.normal(kx2, (B2, IN2), dtype=jnp.float32)
    W2 = jax.random.uniform(kw2, (OUT2, tri2), minval=-0.3, maxval=0.3,
                            dtype=jnp.float32)
    params2 = prepare_quadratic_params(W2, None, IN2, linear_terms=False)
    y2 = jax.block_until_ready(quadratic_pallas_apply(x2, params2))
    np.testing.assert_allclose(np.asarray(y2),
                               np.asarray(quadratic_ref(x2, W2, None, linear_terms=False)),
                               rtol=1e-5, atol=1e-5)

    # --- Config 3: multi-block reduction (Nb=2 -> nbt=3) + OUT tiling (n_oo=2) ---
    B3, IN3, OUT3 = 64, 140, 200
    fan3 = IN3 * (IN3 + 1) // 2 + IN3
    x3 = jax.random.normal(kx3, (B3, IN3), dtype=jnp.float32)
    bound3 = 1.0 / math.sqrt(fan3)
    W3 = jax.random.uniform(kw3, (OUT3, fan3), minval=-bound3, maxval=bound3,
                            dtype=jnp.float32)
    b3 = jax.random.uniform(kb3, (OUT3,), minval=-bound3, maxval=bound3,
                            dtype=jnp.float32)
    params3 = prepare_quadratic_params(W3, b3, IN3, linear_terms=True)
    y3 = jax.block_until_ready(quadratic_pallas_apply(x3, params3))
    y3_ref = quadratic_ref(x3, W3, b3, linear_terms=True)
    np.testing.assert_allclose(np.asarray(y3), np.asarray(y3_ref),
                               rtol=2e-4, atol=2e-4)

    # --- Opt-in bf16 weight/MXU path (numerics differ from the f32 reference) ---
    params3_bf16 = prepare_quadratic_params(W3, b3, IN3, linear_terms=True,
                                            weight_dtype=jnp.bfloat16)
    y3_bf16 = jax.block_until_ready(quadratic_pallas_apply(x3, params3_bf16))
    assert y3_bf16.shape == (B3, OUT3) and bool(jnp.all(jnp.isfinite(y3_bf16)))
    np.testing.assert_allclose(np.asarray(y3_bf16), np.asarray(y3_ref),
                               rtol=1e-1, atol=1e-1)

    print("KERNEL_OK")
</pallas_src>

<mosaic_0001>
module attributes {stable_mosaic.version = 11 : i64} {
  func.func @kernel(%arg0: i32, %arg1: i32, %arg2: i32, %arg3: memref<1xi32, #tpu.memory_space<smem>>, %arg4: memref<1xi32, #tpu.memory_space<smem>>, %arg5: memref<8x16xf32, #tpu.memory_space<vmem>>, %arg6: memref<8x16xf32, #tpu.memory_space<vmem>>, %arg7: memref<1x1x256x128xf32, #tpu.memory_space<vmem>>, %arg8: memref<8x128xf32, #tpu.memory_space<vmem>>, %arg9: memref<8x128xf32, #tpu.memory_space<vmem>>) attributes {dimension_semantics = [#tpu.dimension_semantics<parallel>, #tpu.dimension_semantics<parallel>, #tpu.dimension_semantics<arbitrary>], iteration_bounds = array<i64: 1, 1, 1>, scalar_prefetch = 2 : i64, scratch_operands = 1 : i64, tpu.core_type = #tpu.core_type<tc>, window_params = [{transform_indices = @transform_0, window_bounds = array<i64: 8, 16>}, {transform_indices = @transform_1, window_bounds = array<i64: 8, 16>}, {transform_indices = @transform_2, window_bounds = array<i64: 1, 1, 256, 128>}, {transform_indices = @transform_3, window_bounds = array<i64: 8, 128>}]} {
    %c0_i32 = arith.constant 0 : i32
    %0 = arith.cmpi eq, %arg2, %c0_i32 : i32
    %1 = arith.extui %0 : i1 to i32
    %c0_i32_0 = arith.constant 0 : i32
    %2 = arith.cmpi ne, %1, %c0_i32_0 : i32
    scf.if %2 {
      %cst_14 = arith.constant 0.000000e+00 : f32
      %20 = vector.broadcast %cst_14 : f32 to vector<8x128xf32>
      %c0_15 = arith.constant 0 : index
      %c0_16 = arith.constant 0 : index
      %21 = vector.load %arg9[%c0_15, %c0_16] : memref<8x128xf32, #tpu.memory_space<vmem>>, vector<8x128xf32>
      tpu.vector_store %arg9[%c0_15, %c0_16], %20 {strides = array<i32>} : memref<8x128xf32, #tpu.memory_space<vmem>>, vector<8x128xf32>,
    } else {
    }
    %c0 = arith.constant 0 : index
    %c0_1 = arith.constant 0 : index
    %3 = vector.load %arg5[%c0, %c0_1] : memref<8x16xf32, #tpu.memory_space<vmem>>, vector<8x16xf32>
    %c0_2 = arith.constant 0 : index
    %c0_3 = arith.constant 0 : index
    %4 = vector.load %arg6[%c0_2, %c0_3] : memref<8x16xf32, #tpu.memory_space<vmem>>, vector<8x16xf32>
    %5 = vector.shape_cast %3 : vector<8x16xf32> to vector<8x16x1xf32>
    %6 = vector.shape_cast %4 : vector<8x16xf32> to vector<8x1x16xf32>
    %7 = vector.broadcast %5 : vector<8x16x1xf32> to vector<8x16x16xf32>
    %8 = vector.broadcast %6 : vector<8x1x16xf32> to vector<8x16x16xf32>
    %9 = arith.mulf %7, %8 : vector<8x16x16xf32>
    %10 = vector.shape_cast %9 : vector<8x16x16xf32> to vector<8x256xf32>
    %c0_4 = arith.constant 0 : index
    %c0_5 = arith.constant 0 : index
    %11 = vector.load %arg9[%c0_4, %c0_5] : memref<8x128xf32, #tpu.memory_space<vmem>>, vector<8x128xf32>
    %c0_6 = arith.constant 0 : index
    %c0_7 = arith.constant 0 : index
    %c0_8 = arith.constant 0 : index
    %c0_9 = arith.constant 0 : index
    %12 = vector.load %arg7[%c0_6, %c0_7, %c0_8, %c0_9] : memref<1x1x256x128xf32, #tpu.memory_space<vmem>>, vector<1x1x256x128xf32>
    %13 = vector.shape_cast %12 : vector<1x1x256x128xf32> to vector<256x128xf32>
    %cst = arith.constant dense<0.000000e+00> : vector<8x128xf32>
    %14 = tpu.matmul %10, %13, %cst {dimension_numbers = #tpu.dot_dimension_numbers<[1], [0], [0], [1], [0, 0, 1, 1], [], []>} : vector<8x256xf32>, vector<256x128xf32>, vector<8x128xf32> -> vector<8x128xf32>
    %15 = arith.addf %11, %14 : vector<8x128xf32>
    %c0_10 = arith.constant 0 : index
    %c0_11 = arith.constant 0 : index
    %16 = vector.load %arg9[%c0_10, %c0_11] : memref<8x128xf32, #tpu.memory_space<vmem>>, vector<8x128xf32>
    tpu.vector_store %arg9[%c0_10, %c0_11], %15 {strides = array<i32>} : memref<8x128xf32, #tpu.memory_space<vmem>>, vector<8x128xf32>,
    %c0_i32_12 = arith.constant 0 : i32
    %17 = arith.cmpi eq, %arg2, %c0_i32_12 : i32
    %18 = arith.extui %17 : i1 to i32
    %c0_i32_13 = arith.constant 0 : i32
    %19 = arith.cmpi ne, %18, %c0_i32_13 : i32
    scf.if %19 {
      %c0_14 = arith.constant 0 : index
      %c0_15 = arith.constant 0 : index
      %20 = vector.load %arg9[%c0_14, %c0_15] : memref<8x128xf32, #tpu.memory_space<vmem>>, vector<8x128xf32>
      %c0_16 = arith.constant 0 : index
      %c0_17 = arith.constant 0 : index
      %21 = vector.load %arg8[%c0_16, %c0_17] : memref<8x128xf32, #tpu.memory_space<vmem>>, vector<8x128xf32>
      tpu.vector_store %arg8[%c0_16, %c0_17], %20 {strides = array<i32>} : memref<8x128xf32, #tpu.memory_space<vmem>>, vector<8x128xf32>,
    } else {
    }
    return
  }
  func.func @transform_0(%arg0: i32, %arg1: i32, %arg2: i32, %arg3: memref<1xi32, #tpu.memory_space<smem>>, %arg4: memref<1xi32, #tpu.memory_space<smem>>) -> (i32, i32) {
    %0 = arith.index_cast %arg2 : i32 to index
    %1 = memref.load %arg3[%0] : memref<1xi32, #tpu.memory_space<smem>>
    %c0_i32 = arith.constant 0 : i32
    return %arg0, %1 : i32, i32
  }
  func.func @transform_1(%arg0: i32, %arg1: i32, %arg2: i32, %arg3: memref<1xi32, #tpu.memory_space<smem>>, %arg4: memref<1xi32, #tpu.memory_space<smem>>) -> (i32, i32) {
    %0 = arith.index_cast %arg2 : i32 to index
    %1 = memref.load %arg4[%0] : memref<1xi32, #tpu.memory_space<smem>>
    %c0_i32 = arith.constant 0 : i32
    return %arg0, %1 : i32, i32
  }
  func.func @transform_2(%arg0: i32, %arg1: i32, %arg2: i32, %arg3: memref<1xi32, #tpu.memory_space<smem>>, %arg4: memref<1xi32, #tpu.memory_space<smem>>) -> (i32, i32, i32, i32) {
    %c0_i32 = arith.constant 0 : i32
    %c0_i32_0 = arith.constant 0 : i32
    %c0_i32_1 = arith.constant 0 : i32
    return %arg2, %arg1, %c0_i32, %c0_i32_0 : i32, i32, i32, i32
  }
  func.func @transform_3(%arg0: i32, %arg1: i32, %arg2: i32, %arg3: memref<1xi32, #tpu.memory_space<smem>>, %arg4: memref<1xi32, #tpu.memory_space<smem>>) -> (i32, i32) {
    %c0_i32 = arith.constant 0 : i32
    return %arg0, %arg1 : i32, i32
  }
}

</mosaic_0001>

<bundles_post_ra>
// kernel: tpu_custom_call.1
= control target key start
LH: loop header
LB: loop body
LE: loop exit
PB: predicated region body
PF: predicated region fallthrough
CT: control target
= control target key end

     0   :  { %12 = vsyncpa [#allocation7], 0  ;;  %s1173_s0 = inlined_call_operand.<no memory space> [shape: s32[1], index: 0, kind: input, shape index: {}]   ;;  %s1174_s1 = inlined_call_operand.<no memory space> [shape: s32[1], index: 1, kind: input, shape index: {}]   ;;  %s1175_s2 = inlined_call_operand.hbm [shape: f32[8,16], index: 2, kind: input, shape index: {}]   ;;  %s1176_s3 = inlined_call_operand.vmem [shape: f32[8,16], index: 3, kind: input, shape index: {}]   ;;  %s1177_s4 = inlined_call_operand.hbm [shape: f32[1,1,256,128], index: 4, kind: input, shape index: {}]   ;;  %s1178_s5 = inlined_call_operand.hbm [shape: f32[8,128], index: 5, kind: output, shape index: {}]  }
   0x1   :  { %13 = vsyncpa [#allocation10], 0 }
   0x2   :  { %14 = vsyncpa [#allocation8], 0  ;;  %s750_s20 = sshll.u32 %s1173_s0, 7  ;;  %s944_s24 = smov [#allocation6]  }
   0x3   :  { %s22_s23 = scalar_lea.hbm %s1175_s2, %s750_s20  ;;  %s24_s25 = sshll.u32 %s944_s24, 4  ;;  %s25_s25 = int_to_ptr.vmem [resolvable:$true] %s24_s25 }
   0x4   :  { %s870_s26 = scalar_lea.hbm %s22_s23, 128  ;;  %s872_s29 = scalar_lea.hbm %s1175_s2, 128 }
   0x5   :  { %p871_p0 = scmp.ne.s32.totalorder %s22_s23, %s870_s26  ;;  %p873_p1 = scmp.lt.u32.totalorder %s22_s23, %s1175_s2 }
   0x6   :  { %p874_p2 = scmp.lt.u32.totalorder %s872_s29, %s870_s26  ;;  %p876_p4 = scmp.lt.u32.totalorder %s870_s26, %s22_s23 }
   0x8   :  { %p875_p3 = por %p874_p2, %p873_p1 }
   0xa   :  { %p877_p5 = por %p876_p4, %p875_p3 }
   0xc   :  { %p878_p6 = pnand %p877_p5, %p871_p0 }
   0xe   :  { %881 = shalt.err (!%p878_p6)
}
   0xf   :  { %s882_s0 = scalar_lea.vmem %s25_s25, 128  ;;  %p887_p8 = scmp.lt.s32.totalorder %s25_s25, %s25_s25 }
  0x10   :  { %p883_p7 = scmp.ne.s32.totalorder %s25_s25, %s882_s0  ;;  %p888_p9 = scmp.lt.s32.totalorder %s882_s0, %s882_s0 }
  0x12   :  { %p889_p10 = por %p888_p9, %p887_p8 }
  0x14   :  { %p890_p11 = pnand %p889_p10, %p883_p7 }
  0x16   :  { %893 = shalt.err (!%p890_p11)
}
  0x17   :  { %27 = dma.hbm_to_vmem [thread:$0]  %s22_s23, 128, %s25_s25, [#allocation7]  }
  0x18   :  { %s945_s7 = smov [#allocation9]   ;;  %s894_s2 = scalar_lea.hbm %s1177_s4, 4096 }
  0x19   :  { %s41_s8 = sshll.u32 %s945_s7, 4  ;;  %p895_p12 = scmp.ne.s32.totalorder %s1177_s4, %s894_s2  ;;  %s42_s8 = int_to_ptr.vmem [resolvable:$true] %s41_s8 }
  0x1a   :  { %p898_p13 = scmp.lt.u32.totalorder %s894_s2, %s1177_s4 }
  0x1c   :  { %p900_p0 = pnand %p898_p13, %p895_p12 }
  0x1e   :  { %903 = shalt.err (!%p900_p0)
}
  0x1f   :  { %s904_s15 = scalar_lea.vmem %s42_s8, 4096  ;;  %p909_p2 = scmp.lt.s32.totalorder %s42_s8, %s42_s8 }
  0x20   :  { %p905_p1 = scmp.ne.s32.totalorder %s42_s8, %s904_s15  ;;  %p910_p3 = scmp.lt.s32.totalorder %s904_s15, %s904_s15 }
  0x22   :  { %p911_p4 = por %p910_p3, %p909_p2 }
  0x24   :  { %p912_p5 = pnand %p911_p4, %p905_p1 }
  0x26   :  { %915 = shalt.err (!%p912_p5)
}
  0x27   :  { %s946_s16 = smov 128   ;;  %s947_s17 = smov 8  }
  0x28   :  { %47 = dma.hbm_to_vmem [thread:$0]  %s1177_s4, 4096, %s42_s8, [#allocation10], %s946_s16, %s946_s16, %s947_s17  }
  0x29   :  { %938 = dma.done.wait [#allocation7], 128  }
  0x2a   :  { %939 = vsyncadd [#allocation7], 4294967168 }
  0x2b   :  { %940 = dma.done.wait [#allocation10], 4096  }
  0x2c   :  { %941 = vsyncadd [#allocation10], 4294963200  ;;  %v73_v0 = vlaneseq  ;;  %p61_p6 = scmp.lt.s32.totalorder %s1174_s1, 0  ;;  %v948_v2 = vmov 1966171168   ;;  %v71_v9 = vld [vmem:[#allocation6] sm:$0xff] }
  0x2d   :  { %v164_v3 = vunpack.c.l.s4 %v948_v2  ;;  %v633_v45 = vld [vmem:[#allocation9 + $0x80] sm:$0xff]  ;;  %v634_v46 = vld [vmem:[#allocation9 + $0x88] sm:$0xff]  ;;  %v635_v50 = vld [vmem:[#allocation9 + $0x90] sm:$0xff]  ;;  %s953_s27 = smov 64   ;;  %s954_s28 = smov 48   ;;  %vm595_vm0 = vcmask 130048  }
  0x2e   :  { %v1016_v1 = vshrl.u32 %v73_v0, 7  ;;  %s1180_s1 = smov (!%p61_p6, %s1174_s1), 0  ;;  %v617_v47 = vld [vmem:[#allocation9] sm:$0xff]  ;;  %v787_v48 = vpack.c.bf16 %v634_v46, %v633_v45  ;;  %v618_v49 = vld [vmem:[#allocation9 + $0x8] sm:$0xff]  ;;  %v636_v51 = vld [vmem:[#allocation9 + $0x98] sm:$0xff]  ;;  %s955_s29 = smov 96  }
  0x2f   :  { %s751_s4 = sshll.u32 %s1180_s1, 3  ;;  %v165_v8 = vunpack.c.0.s8 %v164_v3  ;;  %v789_v52 = vpack.c.bf16 %v618_v49, %v617_v47  ;;  %v791_v53 = vpack.c.bf16 %v636_v51, %v635_v50  ;;  %v619_v54 = vld [vmem:[#allocation9 + $0x10] sm:$0xff]  ;;  %v620_v55 = vld [vmem:[#allocation9 + $0x18] sm:$0xff]  ;;  %v637_v56 = vld [vmem:[#allocation9 + $0xa0] sm:$0xff]  ;;  %s951_s1 = smov 32   ;;  %vm597_vm1 = vcmask 261120  }
  0x30   :  { %v97_v4 = vsub.s32 2, %v1016_v1  ;;  %v75_v5 = vsub.s32 0, %v1016_v1  ;;  %v108_v6 = vsub.s32 3, %v1016_v1  ;;  %v86_v7 = vsub.s32 1, %v1016_v1  ;;  %s64_s26 = scalar_lea.vmem %s1176_s3, %s751_s4  ;;  %788 = vmatprep.subr.bf16.mxu0 %v787_v48  ;;  %v638_v57 = vld [vmem:[#allocation9 + $0xa8] sm:$0xff]  ;;  %v621_v60 = vld [vmem:[#allocation9 + $0x20] sm:$0xff] }
  0x31   :  { %v130_v13 = vsub.s32 5, %v1016_v1  ;;  %v119_v14 = vsub.s32 4, %v1016_v1  ;;  %v72_v15 = vld [vmem:[%s64_s26] sm:$0xff]  ;;  %v168_v17 = vsub.s32 %v165_v8, %v1016_v1  ;;  %v152_v23 = vsub.s32 7, %v1016_v1  ;;  %790 = vmatpush3.bf16.msra.mxu0 %v789_v52  ;;  %v622_v61 = vld [vmem:[#allocation9 + $0x28] sm:$0xff]  ;;  %v639_v62 = vld [vmem:[#allocation9 + $0xb0] sm:$0xff] }
  0x32   :  { %v98_v10 = vrot.slane %v71_v9, %v97_v4  ;;  %v76_v11 = vrot.slane %v71_v9, %v75_v5  ;;  %v109_v12 = vrot.slane %v71_v9, %v108_v6  ;;  %v87_v16 = vrot.slane %v71_v9, %v86_v7  ;;  %792 = vmatprep.subr.bf16.mxu0 %v791_v53  ;;  %v640_v63 = vld [vmem:[#allocation9 + $0xb8] sm:$0xff]  ;;  %v623_v3 = vld [vmem:[#allocation9 + $0x30] sm:$0xff]  ;;  %s952_s3 = smov 16   ;;  %s956_s30 = smov 80  }
  0x33   :  { %v162_v18 = vcombine.high %v72_v15, %v72_v15  ;;  %v169_v19 = vrot.slane %v72_v15, %v168_v17  ;;  %v131_v21 = vrot.slane %v71_v9, %v130_v13  ;;  %v120_v22 = vrot.slane %v71_v9, %v119_v14  ;;  %v624_v4 = vld [vmem:[#allocation9 + $0x38] sm:$0xff]  ;;  %s957_s6 = smov 112   ;;  %s958_s0 = smov [#allocation11]  }
  0x34   :  { %104 = vbcast.lane.b32.xlu1 %v98_v10, 264  ;;  %82 = vbcast.lane.b32.xlu0 %v76_v11, 264  ;;  %v141_v24 = vsub.s32 6, %v1016_v1  ;;  %v153_v33 = vrot.slane %v71_v9, %v152_v23  ;;  %v793_v58 = vpack.c.bf16 %v620_v55, %v619_v54  ;;  %v795_v59 = vpack.c.bf16 %v638_v57, %v637_v56  ;;  %s732_s7 = sshll.u32 %s958_s0, 4  ;;  %s733_s7 = int_to_ptr.vmem [resolvable:$true] %s732_s7 }
  0x35   :  { %v176_v20 = vrot.slane %v162_v18, %v168_v17  ;;  %v185_v25 = vrot.slane %v169_v19, %v168_v17  ;;  %v177_v26 = vcombine.high %v169_v19, %v169_v19  ;;  %v797_v0 = vpack.c.bf16 %v622_v61, %v621_v60  ;;  %s916_s8 = scalar_lea.vmem %s733_s7, 128  ;;  %p921_p8 = scmp.lt.s32.totalorder %s733_s7, %s733_s7 }
  0x36   :  { %v142_v34 = vrot.slane %v71_v9, %v141_v24  ;;  %794 = vmatpush3.bf16.msra.mxu0 %v793_v58  ;;  %v799_v2 = vpack.c.bf16 %v640_v63, %v639_v62  ;;  %v949_v6 = vmov 1983009808   ;;  %v950_v9 = vmov 1934713408   ;;  %p917_p7 = scmp.ne.s32.totalorder %s733_s7, %s916_s8  ;;  %p922_p9 = scmp.lt.s32.totalorder %s916_s8, %s916_s8 }
  0x37   :  { %v178_v27 = vcombine.high %v176_v20, %v176_v20  ;;  %v192_v28 = vrot.slane %v176_v20, %v168_v17  ;;  %v207_v29 = vcombine.high %v185_v25, %v185_v25  ;;  %v1033_v30 = vrot.slane %v185_v25, %v75_v5  ;;  %796 = vmatprep.subr.bf16.mxu0 %v795_v59 }
  0x38   :  { %115 = vbcast.lane.b32.xlu1 %v109_v12, 264  ;;  %93 = vbcast.lane.b32.xlu0 %v87_v16, 264  ;;  %v199_v31 = vrot.slane %v177_v26, %v168_v17  ;;  %v270_v7 = vunpack.c.l.s4 %v949_v6  ;;  %vm599_vm2 = vcmask 392192   ;;  %vm601_vm3 = vcmask 523264   ;;  %p923_p10 = por %p922_p9, %p921_p8 }
  0x39   :  { %v206_v32 = vrot.slane %v178_v27, %v168_v17  ;;  %v1035_v35 = vrot.slane %v192_v28, %v75_v5  ;;  %v208_v36 = vcombine.high %v192_v28, %v192_v28  ;;  %v1037_v37 = vrot.slane %v207_v29, %v75_v5 }
  0x3a   :  { %v209_v38 = vcombine.high %v199_v31, %v199_v31  ;;  %v1039_v39 = vrot.slane %v199_v31, %v75_v5  ;;  %798 = vmatpush3.bf16.msra.mxu0 %v797_v0  ;;  %v271_v8 = vunpack.c.0.s8 %v270_v7  ;;  %vm603_vm4 = vcmask 654336   ;;  %p924_p11 = pnand %p923_p10, %p917_p7 }
  0x3b   :  { %v1041_v40 = vrot.slane %v206_v32, %v75_v5  ;;  %v210_v41 = vcombine.high %v206_v32, %v206_v32  ;;  %v1043_v42 = vrot.slane %v208_v36, %v75_v5  ;;  %800 = vmatprep.subr.bf16.mxu0 %v799_v2  ;;  %vm605_vm5 = vcmask 785408  }
  0x3c   :  { %137 = vbcast.lane.b32.xlu1 %v131_v21, 264  ;;  %126 = vbcast.lane.b32.xlu0 %v120_v22, 264  ;;  %v1045_v43 = vrot.slane %v209_v38, %v75_v5  ;;  %v1050_v13 = vsub.s32 %v271_v8, %v1016_v1  ;;  %vm607_vm6 = vcmask 916480  }
  0x3d   :  { %v1047_v44 = vrot.slane %v210_v41, %v75_v5  ;;  %v801_v5 = vpack.c.bf16 %v624_v4, %v623_v3 }
  0x3f   :  { %802 = vmatpush3.bf16.msra.mxu0 %v801_v5 }
  0x40   :  { %159 = vbcast.lane.b32.xlu1 %v153_v33, 264  ;;  %148 = vbcast.lane.b32.xlu0 %v142_v34, 264 }
  0x44   :  { %89 = vbcast.lane.b32.xlu1 %v87_v16, 256  ;;  %78 = vbcast.lane.b32.xlu0 %v76_v11, 256 }
  0x48   :  { %111 = vbcast.lane.b32.xlu1 %v109_v12, 256  ;;  %100 = vbcast.lane.b32.xlu0 %v98_v10, 256  ;;  %v334_v10 = vunpack.c.l.s4 %v950_v9 }
  0x4a   :  { %v335_v18 = vunpack.c.0.s8 %v334_v10 }
  0x4c   :  { %133 = vbcast.lane.b32.xlu1 %v131_v21, 256  ;;  %122 = vbcast.lane.b32.xlu0 %v120_v22, 256  ;;  %v1059_v29 = vsub.s32 %v335_v18, %v1016_v1 }
  0x50   :  { %155 = vbcast.lane.b32.xlu1 %v153_v33, 256  ;;  %144 = vbcast.lane.b32.xlu0 %v142_v34, 256 }
  0xa6   :  { %v105_v11 = vpop.permute.xlu1 %104  ;;  %v83_v12 = vpop.permute.xlu0 %82 }
  0xa7   :  { %v256_v14 = vmul.f32 %v1037_v37, %v105_v11  ;;  %v252_v15 = vmul.f32 %v1033_v30, %v83_v12 }
  0xa9   :  { %v403_v16 = vcombine.low %v252_v15, %v256_v14  ;;  %v404_v17 = vcombine.high %v252_v15, %v256_v14 }
  0xaa   :  { %v116_v19 = vpop.permute.xlu1 %115  ;;  %v94_v20 = vpop.permute.xlu0 %93 }
  0xab   :  { %v411_v21 = vrot.slane %v403_v16, %v1050_v13  ;;  %v418_v22 = vrot.slane %v404_v17, %v1050_v13  ;;  %v258_v23 = vmul.f32 %v1045_v43, %v116_v19  ;;  %v254_v24 = vmul.f32 %v1039_v39, %v94_v20 }
  0xad   :  { %v419_v25 = vcombine.low %v254_v24, %v258_v23  ;;  %v420_v26 = vcombine.high %v254_v24, %v258_v23 }
  0xae   :  { %v138_v27 = vpop.permute.xlu1 %137  ;;  %v127_v28 = vpop.permute.xlu0 %126 }
  0xaf   :  { %v427_v31 = vrot.slane %v419_v25, %v1050_v13  ;;  %v434_v32 = vrot.slane %v420_v26, %v1050_v13  ;;  %v262_v41 = vmul.f32 %v1041_v40, %v138_v27  ;;  %v260_v45 = vmul.f32 %v1035_v35, %v127_v28 }
  0xb1   :  { %v467_v33 = vcombine.low %v411_v21, %v427_v31  ;;  %v468_v34 = vcombine.high %v411_v21, %v427_v31  ;;  %v483_v36 = vcombine.low %v418_v22, %v434_v32  ;;  %v484_v38 = vcombine.high %v418_v22, %v434_v32 }
  0xb2   :  { %v160_v46 = vpop.permute.xlu1 %159  ;;  %v149_v47 = vpop.permute.xlu0 %148 }
  0xb3   :  { %v266_v48 = vmul.f32 %v1047_v44, %v160_v46  ;;  %v264_v49 = vmul.f32 %v1043_v42, %v149_v47  ;;  %v1068_v1 = vrot.slane %v468_v34, %v1059_v29  ;;  %v1071_v50 = vrot.slane %v467_v33, %v1059_v29 }
  0xb4   :  { %v1074_v51 = vrot.slane %v483_v36, %v1059_v29  ;;  %v1077_v52 = vrot.slane %v484_v38, %v1059_v29 }
  0xb5   :  { %v451_v53 = vcombine.low %v262_v41, %v266_v48  ;;  %v452_v54 = vcombine.high %v262_v41, %v266_v48  ;;  %v435_v55 = vcombine.low %v260_v45, %v264_v49  ;;  %v436_v56 = vcombine.high %v260_v45, %v264_v49 }
  0xb6   :  { %v90_v57 = vpop.permute.xlu1 %89  ;;  %v79_v58 = vpop.permute.xlu0 %78 }
  0xb7   :  { %v459_v59 = vrot.slane %v451_v53, %v1050_v13  ;;  %v466_v60 = vrot.slane %v452_v54, %v1050_v13  ;;  %v443_v61 = vrot.slane %v435_v55, %v1050_v13  ;;  %v450_v62 = vrot.slane %v436_v56, %v1050_v13 }
  0xb8   :  { %v253_v4 = vmul.f32 %v1039_v39, %v90_v57  ;;  %v251_v5 = vmul.f32 %v1033_v30, %v79_v58  ;;  %v641_v57 = vld [vmem:[#allocation9 + $0xc0] sm:$0xff]  ;;  %v642_v58 = vld [vmem:[#allocation9 + $0xc8] sm:$0xff] }
  0xb9   :  { %v499_v63 = vcombine.low %v443_v61, %v459_v59  ;;  %v500_v0 = vcombine.high %v443_v61, %v459_v59  ;;  %v515_v2 = vcombine.low %v450_v62, %v466_v60  ;;  %v516_v3 = vcombine.high %v450_v62, %v466_v60  ;;  %v625_v59 = vld [vmem:[#allocation9 + $0x40] sm:$0xff]  ;;  %v626_v62 = vld [vmem:[#allocation9 + $0x48] sm:$0xff] }
  0xba   :  { %v112_v6 = vpop.permute.xlu1 %111  ;;  %v101_v7 = vpop.permute.xlu0 %100 }
  0xbb   :  { %v257_v8 = vmul.f32 %v1045_v43, %v112_v6  ;;  %v255_v9 = vmul.f32 %v1037_v37, %v101_v7  ;;  %v1088_v10 = vrot.slane %v500_v0, %v1059_v29  ;;  %v1091_v11 = vrot.slane %v499_v63, %v1059_v29  ;;  %v643_v6 = vld [vmem:[#allocation9 + $0xd0] sm:$0xff]  ;;  %v644_v7 = vld [vmem:[#allocation9 + $0xd8] sm:$0xff] }
  0xbc   :  { %v1094_v12 = vrot.slane %v515_v2, %v1059_v29  ;;  %v1097_v14 = vrot.slane %v516_v3, %v1059_v29  ;;  %v803_v63 = vpack.c.bf16 %v642_v58, %v641_v57  ;;  %v805_v0 = vpack.c.bf16 %v626_v62, %v625_v59 }
  0xbd   :  { %v283_v39 = vcombine.low %v253_v4, %v257_v8  ;;  %v284_v30 = vcombine.high %v253_v4, %v257_v8  ;;  %v267_v15 = vcombine.low %v251_v5, %v255_v9  ;;  %v268_v16 = vcombine.high %v251_v5, %v255_v9  ;;  %v627_v8 = vld [vmem:[#allocation9 + $0x50] sm:$0xff] }
  0xbe   :  { %v134_v17 = vpop.permute.xlu1 %133  ;;  %v123_v43 = vpop.permute.xlu0 %122  ;;  %v533_v37 = vcombine.low %v1068_v1, %v1088_v10  ;;  %v531_v18 = vcombine.low %v1071_v50, %v1091_v11  ;;  %v532_v19 = vcombine.high %v1071_v50, %v1091_v11  ;;  %v535_v20 = vcombine.low %v1074_v51, %v1094_v12  ;;  %804 = vmatprep.subr.bf16.mxu0 %v803_v63 }
  0xbf   :  { %v291_v21 = vrot.slane %v283_v39, %v1050_v13  ;;  %v298_v22 = vrot.slane %v284_v30, %v1050_v13  ;;  %v275_v23 = vrot.slane %v267_v15, %v1050_v13  ;;  %v282_v24 = vrot.slane %v268_v16, %v1050_v13  ;;  %806 = vmatpush3.bf16.msra.mxu0 %v805_v0  ;;  %v628_v15 = vld [vmem:[#allocation9 + $0x58] sm:$0xff] }
  0xc0   :  { %v534_v25 = vcombine.high %v1068_v1, %v1088_v10  ;;  %v537_v26 = vcombine.low %v1077_v52, %v1097_v14  ;;  %v261_v33 = vmul.f32 %v1041_v40, %v134_v17  ;;  %v259_v34 = vmul.f32 %v1035_v35, %v123_v43  ;;  %v645_v43 = vld [vmem:[#allocation9 + $0xe0] sm:$0xff] }
  0xc1   :  { %v331_v27 = vcombine.low %v275_v23, %v291_v21  ;;  %v332_v28 = vcombine.high %v275_v23, %v291_v21  ;;  %v347_v31 = vcombine.low %v282_v24, %v298_v22  ;;  %v348_v32 = vcombine.high %v282_v24, %v298_v22  ;;  %v646_v21 = vld [vmem:[#allocation9 + $0xe8] sm:$0xff] }
  0xc2   :  { %v156_v36 = vpop.permute.xlu1 %155  ;;  %v145_v38 = vpop.permute.xlu0 %144  ;;  %v536_v41 = vcombine.high %v1074_v51, %v1094_v12  ;;  %v538_v45 = vcombine.high %v1077_v52, %v1097_v14  ;;  %v807_v16 = vpack.c.bf16 %v644_v7, %v643_v6  ;;  %v809_v17 = vpack.c.bf16 %v628_v15, %v627_v8 }
  0xc3   :  { %v265_v46 = vmul.f32 %v1047_v44, %v156_v36  ;;  %v263_v47 = vmul.f32 %v1043_v42, %v145_v38  ;;  %v346_v48 = vrot.slane %v332_v28, %v1059_v29  ;;  %v1125_v49 = vrot.slane %v331_v27, %v1059_v29 }
  0xc4   :  { %v355_v40 = vrot.slane %v347_v31, %v1059_v29  ;;  %v362_v35 = vrot.slane %v348_v32, %v1059_v29  ;;  %808 = vmatprep.subr.bf16.mxu0 %v807_v16 }
  0xc5   :  { %v315_v53 = vcombine.low %v261_v33, %v265_v46  ;;  %v316_v54 = vcombine.high %v261_v33, %v265_v46  ;;  %v299_v55 = vcombine.low %v259_v34, %v263_v47  ;;  %v300_v56 = vcombine.high %v259_v34, %v263_v47  ;;  %v630_v34 = vld [vmem:[#allocation9 + $0x68] sm:$0xff]  ;;  %810 = vmatpush3.bf16.msra.mxu0 %v809_v17 }
  0xc6   :  { %v811_v47 = vpack.c.bf16 %v646_v21, %v645_v43 }
  0xc7   :  { %v323_v44 = vrot.slane %v315_v53, %v1050_v13  ;;  %v330_v42 = vrot.slane %v316_v54, %v1050_v13  ;;  %v307_v60 = vrot.slane %v299_v55, %v1050_v13  ;;  %v314_v61 = vrot.slane %v300_v56, %v1050_v13  ;;  %v648_v53 = vld [vmem:[#allocation9 + $0xf8] sm:$0xff]  ;;  %v631_v54 = vld [vmem:[#allocation9 + $0x70] sm:$0xff] }
  0xc8   :  { %812 = vmatprep.subr.bf16.mxu0 %v811_v47 }
  0xc9   :  { %v363_v2 = vcombine.low %v307_v60, %v323_v44  ;;  %v364_v3 = vcombine.high %v307_v60, %v323_v44  ;;  %v379_v4 = vcombine.low %v314_v61, %v330_v42  ;;  %v380_v5 = vcombine.high %v314_v61, %v330_v42 }
  0xcb   :  { %v378_v9 = vrot.slane %v364_v3, %v1059_v29  ;;  %v1135_v39 = vrot.slane %v363_v2, %v1059_v29  ;;  %v387_v30 = vrot.slane %v379_v4, %v1059_v29  ;;  %v394_v13 = vrot.slane %v380_v5, %v1059_v29  ;;  %v629_v29 = vld [vmem:[#allocation9 + $0x60] sm:$0xff] }
  0xcc   :  { %v813_v51 = vpack.c.bf16 %v630_v34, %v629_v29 }
  0xcd   :  { %v397_v22 = vcombine.low %v346_v48, %v378_v9  ;;  %v396_v23 = vcombine.high %v1125_v49, %v1135_v39  ;;  %v395_v24 = vcombine.low %v1125_v49, %v1135_v39  ;;  %v399_v27 = vcombine.low %v355_v40, %v387_v30 }
  0xce   :  { %v398_v28 = vcombine.high %v346_v48, %v378_v9  ;;  %v401_v31 = vcombine.low %v362_v35, %v394_v13  ;;  %v400_v32 = vcombine.high %v355_v40, %v387_v30  ;;  %v402_v33 = vcombine.high %v362_v35, %v394_v13  ;;  %v647_v35 = vld [vmem:[#allocation9 + $0xf0] sm:$0xff]  ;;  %814 = vmatpush3.bf16.msra.mxu0 %v813_v51 }
  0xcf   :  { %v839_v36 = vpack.i.bf16 %v397_v22, %v533_v37  ;;  %v834_v38 = vpack.i.bf16 %v396_v23, %v532_v19  ;;  %v849_v46 = vpack.i.bf16 %v399_v27, %v535_v20  ;;  %v815_v12 = vpack.c.bf16 %v648_v53, %v647_v35  ;;  %v632_v19 = vld [vmem:[#allocation9 + $0x78] sm:$0xff] }
  0xd0   :  { %v844_v48 = vpack.i.bf16 %v398_v28, %v534_v25  ;;  %v859_v49 = vpack.i.bf16 %v401_v31, %v537_v26  ;;  %v854_v40 = vpack.i.bf16 %v400_v32, %v536_v41  ;;  %v864_v37 = vpack.i.bf16 %v402_v33, %v538_v45 }
  0xd1   :  { %840 = vrot.lane.b32.xlu1 %v839_v36, %s951_s1  ;;  %835 = vrot.lane.b32.xlu0 %v834_v38, %s952_s3  ;;  %v817_v1 = vpack.c.bf16 %v632_v19, %v631_v54 }
  0xd2   :  { %816 = vmatprep.subr.bf16.mxu0 %v815_v12 }
  0xd3   :  { %818 = vmatpush3.bf16.msra.mxu0 %v817_v1 }
  0xd5   :  { %850 = vrot.lane.b32.xlu1 %v849_v46, %s953_s27  ;;  %845 = vrot.lane.b32.xlu0 %v844_v48, %s954_s28 }
  0xd9   :  { %860 = vrot.lane.b32.xlu1 %v859_v49, %s955_s29  ;;  %855 = vrot.lane.b32.xlu0 %v854_v40, %s956_s30 }
  0xdd   :  { %865 = vrot.lane.b32.xlu0 %v864_v37, %s957_s6 }
 0x143   :  { %v841_v52 = vpop.permute.xlu1 %840  ;;  %v836_v10 = vpop.permute.xlu0 %835 }
 0x144   :  { %v838_v14 = vunpack.i.h.bf16 %v836_v10  ;;  %v837_v20 = vunpack.i.l.bf16 %v836_v10  ;;  %v843_v25 = vunpack.i.h.bf16 %v841_v52  ;;  %v842_v26 = vunpack.i.l.bf16 %v841_v52 }
 0x146   :  { %v596_v41 = vsel %vm595_vm0, %v395_v24, %v838_v14  ;;  %v609_v45 = vsel %vm595_vm0, %v531_v18, %v837_v20 }
 0x147   :  { %v851_v55 = vpop.permute.xlu1 %850  ;;  %v846_v56 = vpop.permute.xlu0 %845  ;;  %v598_v42 = vsel %vm597_vm1, %v596_v41, %v843_v25  ;;  %v610_v60 = vsel %vm597_vm1, %v609_v45, %v842_v26 }
 0x148   :  { %v848_v57 = vunpack.i.h.bf16 %v846_v56  ;;  %v847_v58 = vunpack.i.l.bf16 %v846_v56  ;;  %v853_v59 = vunpack.i.h.bf16 %v851_v55  ;;  %v852_v44 = vunpack.i.l.bf16 %v851_v55 }
 0x14a   :  { %v600_v61 = vsel %vm599_vm2, %v598_v42, %v848_v57  ;;  %v611_v62 = vsel %vm599_vm2, %v610_v60, %v847_v58 }
 0x14b   :  { %v861_v63 = vpop.permute.xlu1 %860  ;;  %v856_v0 = vpop.permute.xlu0 %855  ;;  %v612_v18 = vsel %vm601_vm3, %v611_v62, %v852_v44  ;;  %v602_v4 = vsel %vm601_vm3, %v600_v61, %v853_v59 }
 0x14c   :  { %v858_v2 = vunpack.i.h.bf16 %v856_v0  ;;  %v857_v3 = vunpack.i.l.bf16 %v856_v0  ;;  %v863_v50 = vunpack.i.h.bf16 %v861_v63  ;;  %v862_v11 = vunpack.i.l.bf16 %v861_v63 }
 0x14e   :  { %v613_v5 = vsel %vm603_vm4, %v612_v18, %v857_v3  ;;  %v604_v6 = vsel %vm603_vm4, %v602_v4, %v858_v2 }
 0x14f   :  { %v866_v7 = vpop.permute.xlu0 %865  ;;  %v614_v39 = vsel %vm605_vm5, %v613_v5, %v862_v11  ;;  %v606_v30 = vsel %vm605_vm5, %v604_v6, %v863_v50 }
 0x150   :  { %v868_v8 = vunpack.i.h.bf16 %v866_v7  ;;  %v867_v9 = vunpack.i.l.bf16 %v866_v7 }
 0x152   :  { %v615_v13 = vsel %vm607_vm6, %v614_v39, %v867_v9  ;;  %v608_v15 = vsel %vm607_vm6, %v606_v30, %v868_v8 }
 0x153   :  { %713 = vmatprep.mubr.f32.mxu0 %v615_v13 }
 0x154   :  { %714 = vmatmul.mubr.f32.vlgmr.msra.gmra.mrb[0].mxu0 %v608_v15 }
 0x227   :  { %v784_v16 = vpop.f32.mrb[0].mxu0 }
 0x228   :  { %v785_v17 = vpop.f32.mrb[1].mxu0 }
 0x229   :  { %v786_v43 = vadd.f32 %v785_v17, %v784_v16 }
 0x22b   :  { %725 = vst [vmem:[#allocation11] sm:$0xff] %v786_v43 }
 0x22c   :  { %927 = shalt.err (!%p924_p11)
}
 0x22d   :  { %s928_s2 = scalar_lea.hbm %s1178_s5, 128 }
 0x22e   :  { %p929_p12 = scmp.ne.s32.totalorder %s1178_s5, %s928_s2  ;;  %p932_p13 = scmp.lt.u32.totalorder %s928_s2, %s1178_s5 }
 0x230   :  { %p934_p0 = pnand %p932_p13, %p929_p12 }
 0x232   :  { %937 = shalt.err (!%p934_p0)
}
 0x233   :  { %735 = dma.vmem_to_hbm [thread:$0]  %s733_s7, 128, %s1178_s5, [#allocation8]  }
 0x234   :  { %942 = dma.done.wait [#allocation8], 128  }
 0x235   :  { %943 = vsyncadd [#allocation8], 4294967168 }
 0x236   :  { %739 = vsyncpa [#allocation7], 1 }
 0x237   :  { %740 = vsyncpa [#allocation10], 1 }
 0x238   :  { %741 = vsyncpa [#allocation8], 1 }

</bundles_post_ra>
